<compile_context>
chip_gen: v7x
topology: tpu7x:2x2x1
jax: 0.10.0
libtpu: 0.0.40
codegen_flags: <defaults>
</compile_context>

<pallas_src>
import jax
import jax.numpy as jnp
from jax.experimental import pallas as pl
from jax.experimental.pallas import tpu as pltpu


def _lstm_cell_kernel(x_ref, h_ref, c_ref, w_ref, b_ref, out_ref):
    H = h_ref.shape[1]

    # Fused input [x | h] along lanes; single bf16 cast; single MXU pass.
    xh = jnp.concatenate([x_ref[...], h_ref[...]], axis=-1).astype(w_ref.dtype)

    # preact = [x|h] @ [Wi ; Wh] + (b_i2h + b_h2h)   -> (B, 4H), f32 acc.
    preact = b_ref[...] + jnp.dot(
        xh, w_ref[...], preferred_element_type=jnp.float32)

    # Gate layout matches the PyTorch module: [i | f | o | g].
    # Full-width activation passes on the EUP (one sigmoid, one tanh over the
    # whole (B, 4H) vreg) instead of four narrow-lane slices.
    sig = jax.nn.sigmoid(preact)
    th = jnp.tanh(preact)

    i_t = sig[:, 0:H]
    f_t = sig[:, H:2 * H]
    o_t = sig[:, 2 * H:3 * H]
    g_t = th[:, 3 * H:4 * H]

    # Cell / hidden update in f32.
    c_t = c_ref[...].astype(jnp.float32) * f_t + i_t * g_t
    h_t = o_t * jnp.tanh(c_t)

    # Output slab [i | f | c | h]: i/f stay at their original lane positions
    # (no XLU shuffle for lanes 0:2H); one unmasked 128-lane f32 store.
    out_ref[...] = jnp.concatenate([i_t, f_t, c_t, h_t], axis=-1)


def lstm_cell_pallas(x, hid, cell, w_cat, bias):
    """x: (B, In) f32; hid/cell: (B, H) f32; w_cat: (In+H, 4H) bf16;
    bias: (1, 4H) f32.  Returns (h_t, c_t, f_t, i_t), each (B, H) f32."""
    B, H = hid.shape
    In = x.shape[1]
    K = In + H

    # Advisory cost hint for XLA's scheduler (kernel is tiny / overhead-bound).
    flops = 2 * B * K * 4 * H + 10 * B * H
    transcendentals = 2 * B * 4 * H + B * H
    bytes_accessed = (
        x.size * x.dtype.itemsize
        + hid.size * hid.dtype.itemsize
        + cell.size * cell.dtype.itemsize
        + w_cat.size * w_cat.dtype.itemsize
        + bias.size * bias.dtype.itemsize
        + B * 4 * H * 4  # f32 output slab
    )

    vmem = pl.BlockSpec(memory_space=pltpu.MemorySpace.VMEM)
    out = pl.pallas_call(
        _lstm_cell_kernel,
        out_shape=jax.ShapeDtypeStruct((B, 4 * H), jnp.float32),
        in_specs=[vmem] * 5,
        out_specs=vmem,
        cost_estimate=pl.CostEstimate(
            flops=flops,
            transcendentals=transcendentals,
            bytes_accessed=bytes_accessed,
        ),
    )(x, hid, cell, w_cat, bias)

    i_t = out[:, 0:H]
    f_t = out[:, H:2 * H]
    c_t = out[:, 2 * H:3 * H]
    h_t = out[:, 3 * H:4 * H]
    return h_t, c_t, f_t, i_t


class MYLSTMCellWithGateoutputPallas:
    """JAX/Pallas port of MYLSTMCellWithGateoutput (forward only)."""

    def __init__(self, input_size, hidden_size, key, bias=True,
                 param_dtype=jnp.bfloat16):
        self.input_size = input_size
        self.hidden_size = hidden_size
        k1, k2, k3, k4 = jax.random.split(key, 4)
        # PyTorch nn.Linear default init: U(-1/sqrt(in), 1/sqrt(in))
        bound_i = 1.0 / jnp.sqrt(jnp.float32(input_size))
        bound_h = 1.0 / jnp.sqrt(jnp.float32(hidden_size))
        # Per-Linear weights in (in_features, 4H) layout (== PyTorch weight.T)
        w_i2h = jax.random.uniform(
            k1, (input_size, 4 * hidden_size), jnp.float32, -bound_i, bound_i)
        w_h2h = jax.random.uniform(
            k3, (hidden_size, 4 * hidden_size), jnp.float32, -bound_h, bound_h)
        # Fused weight: single (In+H, 4H) bf16 GEMM operand.
        self.w_cat = jnp.concatenate([w_i2h, w_h2h], axis=0).astype(param_dtype)
        if bias:
            b_i2h = jax.random.uniform(
                k2, (1, 4 * hidden_size), jnp.float32, -bound_i, bound_i)
            b_h2h = jax.random.uniform(
                k4, (1, 4 * hidden_size), jnp.float32, -bound_h, bound_h)
            # Fold the two Linear biases into one at init time (kept f32).
            self.bias = (b_i2h + b_h2h).astype(jnp.float32)
        else:
            self.bias = jnp.zeros((1, 4 * hidden_size), jnp.float32)

    def __call__(self, x, hidden):
        # hidden mirrors the PyTorch call convention: hidden[1] = (hid, cell),
        # each of shape (1, B, H).
        hid, cell = hidden[1]
        B = hid.shape[1]
        hid2d = hid.reshape(B, -1)
        cell2d = cell.reshape(B, -1)
        h_t, c_t, f_t, i_t = lstm_cell_pallas(
            x, hid2d, cell2d, self.w_cat, self.bias)
        h_t3 = h_t.reshape(1, B, -1)
        c_t3 = c_t.reshape(1, B, -1)
        return (h_t3, (h_t3, c_t3), f_t, i_t)


def _reference_forward(x, hid, cell, w_cat, bias, H):
    """Pure-JAX f32 reference mirroring the PyTorch forward, for sanity check."""
    xh = jnp.concatenate([x, hid], axis=-1)
    preact = xh @ w_cat.astype(jnp.float32) + bias
    gates = jax.nn.sigmoid(preact[:, :3 * H])
    g_t = jnp.tanh(preact[:, 3 * H:])
    i_t = gates[:, :H]
    f_t = gates[:, H:2 * H]
    o_t = gates[:, -H:]
    c_t = cell * f_t + i_t * g_t
    h_t = o_t * jnp.tanh(c_t)
    return h_t, c_t, f_t, i_t


if __name__ == "__main__":
    B = 8
    INPUT_SIZE = 16
    HIDDEN_SIZE = 32   # 4H = 128 -> output slab is exactly one lane-dense vreg

    key = jax.random.PRNGKey(0)
    k_param, k_x, k_h, k_c = jax.random.split(key, 4)

    cellmod = MYLSTMCellWithGateoutputPallas(INPUT_SIZE, HIDDEN_SIZE, k_param)

    x = jax.random.normal(k_x, (B, INPUT_SIZE), jnp.float32)
    h0 = jax.random.normal(k_h, (1, B, HIDDEN_SIZE), jnp.float32)
    c0 = jax.random.normal(k_c, (1, B, HIDDEN_SIZE), jnp.float32)
    hidden = (h0, (h0, c0))  # hidden[1] = (hid, cell), as the module expects

    h_t3, (h_t3b, c_t3), f_t, i_t = cellmod(x, hidden)
    jax.block_until_ready((h_t3, c_t3, f_t, i_t))

    # Sanity check vs. pure-JAX f32 reference (tolerance loosened because the
    # kernel uses bf16 MXU operands; gate/cell math stays f32).
    rh, rc, rf, ri = _reference_forward(
        x, h0.reshape(B, -1), c0.reshape(B, -1),
        cellmod.w_cat, cellmod.bias, HIDDEN_SIZE)
    assert h_t3.shape == (1, B, HIDDEN_SIZE)
    assert c_t3.shape == (1, B, HIDDEN_SIZE)
    assert f_t.shape == (B, HIDDEN_SIZE) and i_t.shape == (B, HIDDEN_SIZE)
    assert jnp.allclose(h_t3.reshape(B, -1), rh, atol=1e-2)
    assert jnp.allclose(c_t3.reshape(B, -1), rc, atol=1e-2)
    assert jnp.allclose(f_t, rf, atol=1e-2)
    assert jnp.allclose(i_t, ri, atol=1e-2)

    print("KERNEL_OK")
</pallas_src>

<mosaic_0001>
module attributes {stable_mosaic.version = 11 : i64} {
  func.func @_lstm_cell_kernel(%arg0: memref<8x16xf32, #tpu.memory_space<vmem>>, %arg1: memref<8x32xf32, #tpu.memory_space<vmem>>, %arg2: memref<8x32xf32, #tpu.memory_space<vmem>>, %arg3: memref<48x128xbf16, #tpu.memory_space<vmem>>, %arg4: memref<1x128xf32, #tpu.memory_space<vmem>>, %arg5: memref<8x128xf32, #tpu.memory_space<vmem>>) attributes {dimension_semantics = [], scalar_prefetch = 0 : i64, scratch_operands = 0 : i64, tpu.core_type = #tpu.core_type<tc>} {
    %c0 = arith.constant 0 : index
    %c0_0 = arith.constant 0 : index
    %0 = vector.load %arg0[%c0, %c0_0] : memref<8x16xf32, #tpu.memory_space<vmem>>, vector<8x16xf32>
    %c0_1 = arith.constant 0 : index
    %c0_2 = arith.constant 0 : index
    %1 = vector.load %arg1[%c0_1, %c0_2] : memref<8x32xf32, #tpu.memory_space<vmem>>, vector<8x32xf32>
    %2 = tpu.concatenate %0, %1 in 1 : vector<8x16xf32>, vector<8x32xf32> -> vector<8x48xf32>
    %3 = arith.truncf %2 : vector<8x48xf32> to vector<8x48xbf16>
    %c0_3 = arith.constant 0 : index
    %c0_4 = arith.constant 0 : index
    %4 = vector.load %arg4[%c0_3, %c0_4] : memref<1x128xf32, #tpu.memory_space<vmem>>, vector<1x128xf32>
    %c0_5 = arith.constant 0 : index
    %c0_6 = arith.constant 0 : index
    %5 = vector.load %arg3[%c0_5, %c0_6] : memref<48x128xbf16, #tpu.memory_space<vmem>>, vector<48x128xbf16>
    %cst = arith.constant dense<0.000000e+00> : vector<8x128xf32>
    %6 = tpu.matmul %3, %5, %cst {dimension_numbers = #tpu.dot_dimension_numbers<[1], [0], [0], [1], [0, 0, 1, 1], [], []>} : vector<8x48xbf16>, vector<48x128xbf16>, vector<8x128xf32> -> vector<8x128xf32>
    %7 = vector.broadcast %4 : vector<1x128xf32> to vector<8x128xf32>
    %8 = arith.addf %7, %6 : vector<8x128xf32>
    %9 = arith.negf %8 : vector<8x128xf32>
    %10 = math.exp %9 : vector<8x128xf32>
    %cst_7 = arith.constant 1.000000e+00 : f32
    %11 = vector.broadcast %cst_7 : f32 to vector<8x128xf32>
    %12 = arith.addf %11, %10 : vector<8x128xf32>
    %13 = arith.divf %11, %12 : vector<8x128xf32>
    %14 = math.tanh %8 : vector<8x128xf32>
    %15 = vector.extract_strided_slice %13 {offsets = [0, 0], sizes = [8, 32], strides = [1, 1]} : vector<8x128xf32> to vector<8x32xf32>
    %16 = vector.extract_strided_slice %13 {offsets = [0, 32], sizes = [8, 32], strides = [1, 1]} : vector<8x128xf32> to vector<8x32xf32>
    %17 = vector.extract_strided_slice %13 {offsets = [0, 64], sizes = [8, 32], strides = [1, 1]} : vector<8x128xf32> to vector<8x32xf32>
    %18 = vector.extract_strided_slice %14 {offsets = [0, 96], sizes = [8, 32], strides = [1, 1]} : vector<8x128xf32> to vector<8x32xf32>
    %c0_8 = arith.constant 0 : index
    %c0_9 = arith.constant 0 : index
    %19 = vector.load %arg2[%c0_8, %c0_9] : memref<8x32xf32, #tpu.memory_space<vmem>>, vector<8x32xf32>
    %20 = arith.mulf %19, %16 : vector<8x32xf32>
    %21 = arith.mulf %15, %18 : vector<8x32xf32>
    %22 = arith.addf %20, %21 : vector<8x32xf32>
    %23 = math.tanh %22 : vector<8x32xf32>
    %24 = arith.mulf %17, %23 : vector<8x32xf32>
    %25 = tpu.concatenate %15, %16, %22, %24 in 1 : vector<8x32xf32>, vector<8x32xf32>, vector<8x32xf32>, vector<8x32xf32> -> vector<8x128xf32>
    %c0_10 = arith.constant 0 : index
    %c0_11 = arith.constant 0 : index
    %26 = vector.load %arg5[%c0_10, %c0_11] : memref<8x128xf32, #tpu.memory_space<vmem>>, vector<8x128xf32>
    tpu.vector_store %arg5[%c0_10, %c0_11], %25 {strides = array<i32>} : memref<8x128xf32, #tpu.memory_space<vmem>>, vector<8x128xf32>,
    return
  }
}

</mosaic_0001>

<bundles_post_ra>
// kernel: tpu_custom_call.1
= control target key start
LH: loop header
LB: loop body
LE: loop exit
PB: predicated region body
PF: predicated region fallthrough
CT: control target
= control target key end

     0   :  { %10 = vsyncpa [#allocation3], 0  ;;  %s488_s0 = inlined_call_operand.hbm [shape: f32[8,16], index: 0, kind: input, shape index: {}]   ;;  %s489_s1 = inlined_call_operand.hbm [shape: f32[8,32], index: 1, kind: input, shape index: {}]   ;;  %s490_s2 = inlined_call_operand.hbm [shape: f32[8,32], index: 2, kind: input, shape index: {}]   ;;  %s491_s3 = inlined_call_operand.hbm [shape: bf16[48,128], index: 3, kind: input, shape index: {}]   ;;  %s492_s4 = inlined_call_operand.vmem [shape: f32[1,128], index: 4, kind: input, shape index: {}]   ;;  %s493_s5 = inlined_call_operand.hbm [shape: f32[8,128], index: 5, kind: output, shape index: {}]  }
   0x1   :  { %11 = vsyncpa [#allocation6], 0 }
   0x2   :  { %12 = vsyncpa [#allocation9], 0 }
   0x3   :  { %13 = vsyncpa [#allocation4], 0  ;;  %s372_s18 = smov [#allocation5]   ;;  %s373_s20 = smov [#allocation2]  }
   0x4   :  { %s30_s19 = sshll.u32 %s372_s18, 4  ;;  %s20_s21 = sshll.u32 %s373_s20, 4  ;;  %s31_s19 = int_to_ptr.vmem [resolvable:$true] %s30_s19  ;;  %s21_s21 = int_to_ptr.vmem [resolvable:$true] %s20_s21 }
   0x5   :  { %s254_s24 = scalar_lea.hbm %s489_s1, 128 }
   0x6   :  { %p255_p0 = scmp.ne.s32.totalorder %s489_s1, %s254_s24  ;;  %p258_p1 = scmp.lt.u32.totalorder %s254_s24, %s489_s1 }
   0x8   :  { %p260_p2 = pnand %p258_p1, %p255_p0 }
   0xa   :  { %263 = shalt.err (!%p260_p2)
}
   0xb   :  { %s264_s29 = scalar_lea.vmem %s31_s19, 128  ;;  %p269_p4 = scmp.lt.s32.totalorder %s31_s19, %s31_s19 }
   0xc   :  { %p265_p3 = scmp.ne.s32.totalorder %s31_s19, %s264_s29  ;;  %p270_p5 = scmp.lt.s32.totalorder %s264_s29, %s264_s29 }
   0xe   :  { %p271_p6 = por %p270_p5, %p269_p4 }
  0x10   :  { %p272_p7 = pnand %p271_p6, %p265_p3 }
  0x12   :  { %275 = shalt.err (!%p272_p7)
}
  0x13   :  { %33 = dma.hbm_to_vmem [thread:$0]  %s489_s1, 128, %s31_s19, [#allocation6]  }
  0x14   :  { %s276_s9 = scalar_lea.hbm %s488_s0, 128 }
  0x15   :  { %p277_p8 = scmp.ne.s32.totalorder %s488_s0, %s276_s9  ;;  %p280_p9 = scmp.lt.u32.totalorder %s276_s9, %s488_s0 }
  0x17   :  { %p282_p10 = pnand %p280_p9, %p277_p8 }
  0x19   :  { %285 = shalt.err (!%p282_p10)
}
  0x1a   :  { %s286_s14 = scalar_lea.vmem %s21_s21, 128  ;;  %p291_p12 = scmp.lt.s32.totalorder %s21_s21, %s21_s21 }
  0x1b   :  { %p287_p11 = scmp.ne.s32.totalorder %s21_s21, %s286_s14  ;;  %p292_p13 = scmp.lt.s32.totalorder %s286_s14, %s286_s14 }
  0x1d   :  { %p293_p0 = por %p292_p13, %p291_p12 }
  0x1f   :  { %p294_p1 = pnand %p293_p0, %p287_p11 }
  0x21   :  { %297 = shalt.err (!%p294_p1)
}
  0x22   :  { %23 = dma.hbm_to_vmem [thread:$0]  %s488_s0, 128, %s21_s21, [#allocation3]  }
  0x23   :  { %s374_s16 = smov [#allocation7]   ;;  %s375_s18 = smov [#allocation8]  }
  0x24   :  { %s40_s17 = sshll.u32 %s374_s16, 4  ;;  %s49_s19 = sshll.u32 %s375_s18, 4  ;;  %s41_s17 = int_to_ptr.vmem [resolvable:$true] %s40_s17  ;;  %s438_s19 = int_to_ptr.vmem [resolvable:$true] %s49_s19 }
  0x25   :  { %s298_s23 = scalar_lea.hbm %s490_s2, 128 }
  0x26   :  { %p299_p2 = scmp.ne.s32.totalorder %s490_s2, %s298_s23  ;;  %p302_p3 = scmp.lt.u32.totalorder %s298_s23, %s490_s2 }
  0x28   :  { %p304_p4 = pnand %p302_p3, %p299_p2 }
  0x2a   :  { %307 = shalt.err (!%p304_p4)
}
  0x2b   :  { %s308_s0 = scalar_lea.vmem %s41_s17, 128  ;;  %p313_p6 = scmp.lt.s32.totalorder %s41_s17, %s41_s17 }
  0x2c   :  { %p309_p5 = scmp.ne.s32.totalorder %s41_s17, %s308_s0  ;;  %p314_p7 = scmp.lt.s32.totalorder %s308_s0, %s308_s0 }
  0x2e   :  { %p315_p8 = por %p314_p7, %p313_p6 }
  0x30   :  { %p316_p9 = pnand %p315_p8, %p309_p5 }
  0x32   :  { %319 = shalt.err (!%p316_p9)
}
  0x33   :  { %43 = dma.hbm_to_vmem [thread:$0]  %s490_s2, 128, %s41_s17, [#allocation6]  }
  0x34   :  { %s320_s6 = scalar_lea.hbm %s491_s3, 384 }
  0x35   :  { %p321_p10 = scmp.ne.s32.totalorder %s491_s3, %s320_s6  ;;  %p324_p11 = scmp.lt.u32.totalorder %s320_s6, %s491_s3 }
  0x37   :  { %p326_p12 = pnand %p324_p11, %p321_p10 }
  0x39   :  { %329 = shalt.err (!%p326_p12)
}
  0x3a   :  { %s330_s11 = scalar_lea.vmem %s438_s19, 384  ;;  %p335_p0 = scmp.lt.s32.totalorder %s438_s19, %s438_s19 }
  0x3b   :  { %p331_p13 = scmp.ne.s32.totalorder %s438_s19, %s330_s11  ;;  %p336_p1 = scmp.lt.s32.totalorder %s330_s11, %s330_s11 }
  0x3d   :  { %p337_p2 = por %p336_p1, %p335_p0 }
  0x3f   :  { %p338_p3 = pnand %p337_p2, %p331_p13 }
  0x41   :  { %341 = shalt.err (!%p338_p3)
}
  0x42   :  { %s376_s2 = smov 64   ;;  %s377_s12 = smov 4  }
  0x43   :  { %55 = dma.hbm_to_vmem [thread:$0]  %s491_s3, 384, %s438_s19, [#allocation9], %s376_s2, %s376_s2, %s377_s12  }
  0x44   :  { %364 = dma.done.wait [#allocation3], 128  }
  0x45   :  { %365 = vsyncadd [#allocation3], 4294967168 }
  0x46   :  { %366 = dma.done.wait [#allocation6], 256  }
  0x47   :  { %367 = vsyncadd [#allocation6], 4294967040 }
  0x48   :  { %368 = dma.done.wait [#allocation9], 384  }
  0x49   :  { %369 = vsyncadd [#allocation9], 4294966912  ;;  %v378_v0 = vmov 0.0   ;;  %vm379_vm0 = vmmov 0   ;;  %v72_v1 = vld [vmem:[#allocation5] sm:$0xff]  ;;  %s380_s1 = smov 16  }
  0x4a   :  { %221 = vmatprep.subr.bf16.mxu0 %v378_v0  ;;  %227 = vmatprep.mubr.msk.bf16.mxu0 %vm379_vm0, %v378_v0  ;;  %v243_v2 = vld [vmem:[#allocation8] sm:$0xff]   ;;  %v244_v3 = vld [vmem:[#allocation8 + $0x8] sm:$0xff]   ;;  %v245_v4 = vld [vmem:[#allocation8 + $0x10] sm:$0xff]   ;;  %vm77_vm1 = vcmask 130048   ;;  %vm105_vm2 = vcmask 392192   ;;  %s381_s16 = smov 32  }
  0x4b   :  { %74 = vrot.lane.b32.xlu0 %v72_v1, %s380_s1  ;;  %222 = vmatpush3.bf16.msra.mxu0 %v243_v2  ;;  %v71_v5 = vld [vmem:[#allocation2] sm:$0xff]  ;;  %s382_s17 = smov 96   ;;  %v163_v21 = vld [vmem:[#allocation7] sm:$0xff]  ;;  %vm189_vm3 = vcmask 523264   ;;  %vm191_vm4 = vcmask 785408  }
  0x4c   :  { %223 = vmatprep.subr.bf16.mxu0 %v378_v0  ;;  %v215_v9 = vld [vmem:[%s492_s4] ss:$0 sm:$0xff]  ;;  %s383_s4 = smov [#allocation10]  }
  0x4d   :  { %s200_s18 = sshll.u32 %s383_s4, 4  ;;  %s201_s18 = int_to_ptr.vmem [resolvable:$true] %s200_s18 }
  0x4e   :  { %s342_s19 = scalar_lea.vmem %s201_s18, 128  ;;  %p347_p5 = scmp.lt.s32.totalorder %s201_s18, %s201_s18 }
  0x4f   :  { %224 = vmatpush3.bf16.msra.mxu0 %v244_v3  ;;  %p343_p4 = scmp.ne.s32.totalorder %s201_s18, %s342_s19  ;;  %p348_p6 = scmp.lt.s32.totalorder %s342_s19, %s342_s19 }
  0x50   :  { %225 = vmatprep.subr.bf16.mxu0 %v378_v0 }
  0x51   :  { %p349_p7 = por %p348_p6, %p347_p5 }
  0x53   :  { %226 = vmatpush3.bf16.msra.mxu0 %v245_v4  ;;  %p350_p8 = pnand %p349_p7, %p343_p4 }
  0xbd   :  { %v75_v6 = vpop.permute.xlu0 %74 }
  0xbe   :  { %v78_v7 = vsel %vm77_vm1, %v71_v5, %v75_v6 }
  0xbf   :  { %v79_v8 = vpack.c.bf16 %v78_v7, %v78_v7 }
  0xc1   :  { %228 = vmatmul.mubr.msk.bf16.vlgmr.msra.gmra.mrb[0].mxu0 %vm105_vm2, %v79_v8 }
 0x194   :  { %v143_v10 = vpop.f32.mrb[0].mxu0 }
 0x195   :  { %v155_v11 = vadd.f32 %v215_v9, %v143_v10  ;;  %v229_v12 = vpop.f32.mrb[1].mxu0 }
 0x196   :  { %v146_v13 = vpop.f32.mrb[2].mxu0 }
 0x197   :  { %v216_v14 = vmul.f32 -1.442695, %v155_v11  ;;  %246 = vtanh.f32 %v155_v11  ;;  %v230_v15 = vpop.f32.mrb[3].mxu0 }
 0x199   :  { %248 = vpow2.f32 %v216_v14 }
 0x1a1   :  { %v247_v16 = vpop.eup %246 }
 0x1a2   :  { %170 = vrot.lane.b32.xlu1 %v247_v16, %s381_s16 }
 0x1a3   :  { %v249_v17 = vpop.eup %248 }
 0x1a4   :  { %v159_v18 = vadd.f32 1.0, %v249_v17 }
 0x1a6   :  { %250 = vrcp.f32 %v159_v18 }
 0x1b0   :  { %v251_v19 = vpop.eup %250 }
 0x1b1   :  { %165 = vrot.lane.b32.xlu0 %v251_v19, %s382_s17 }
 0x214   :  { %v171_v20 = vpop.permute.xlu1 %170 }
 0x215   :  { %v173_v23 = vmul.f32 %v251_v19, %v171_v20 }
 0x223   :  { %v166_v22 = vpop.permute.xlu0 %165 }
 0x224   :  { %v168_v24 = vmul.f32 %v166_v22, %v163_v21 }
 0x226   :  { %v174_v25 = vadd.f32 %v173_v23, %v168_v24 }
 0x228   :  { %182 = vrot.lane.b32.xlu0 %v174_v25, %s376_s2  ;;  %252 = vtanh.f32 %v174_v25 }
 0x232   :  { %v253_v26 = vpop.eup %252 }
 0x233   :  { %177 = vrot.lane.b32.xlu1 %v253_v26, %s376_s2 }
 0x29a   :  { %v183_v29 = vpop.permute.xlu0 %182 }
 0x29b   :  { %v190_v30 = vsel %vm189_vm3, %v251_v19, %v183_v29 }
 0x2a5   :  { %v178_v27 = vpop.permute.xlu1 %177 }
 0x2a6   :  { %v180_v28 = vmul.f32 %v251_v19, %v178_v27 }
 0x2a8   :  { %186 = vrot.lane.b32.xlu1 %v180_v28, %s381_s16 }
 0x31a   :  { %v187_v31 = vpop.permute.xlu1 %186 }
 0x31b   :  { %v192_v32 = vsel %vm191_vm4, %v190_v30, %v187_v31 }
 0x31c   :  { %193 = vst [vmem:[#allocation10] sm:$0xff] %v192_v32 }
 0x31d   :  { %353 = shalt.err (!%p350_p8)
}
 0x31e   :  { %s354_s23 = scalar_lea.hbm %s493_s5, 128 }
 0x31f   :  { %p355_p9 = scmp.ne.s32.totalorder %s493_s5, %s354_s23  ;;  %p358_p10 = scmp.lt.u32.totalorder %s354_s23, %s493_s5 }
 0x321   :  { %p360_p11 = pnand %p358_p10, %p355_p9 }
 0x323   :  { %363 = shalt.err (!%p360_p11)
}
 0x324   :  { %203 = dma.vmem_to_hbm [thread:$0]  %s201_s18, 128, %s493_s5, [#allocation4]  }
 0x325   :  { %370 = dma.done.wait [#allocation4], 128  }
 0x326   :  { %371 = vsyncadd [#allocation4], 4294967168 }
 0x327   :  { %207 = vsyncpa [#allocation3], 1 }
 0x328   :  { %208 = vsyncpa [#allocation6], 1 }
 0x329   :  { %209 = vsyncpa [#allocation9], 1 }
 0x32a   :  { %210 = vsyncpa [#allocation4], 1 }

</bundles_post_ra>
